<compile_context>
chip_gen: v7x
topology: tpu7x:2x2x1
jax: 0.10.0
libtpu: 0.0.40
codegen_flags: <defaults>
</compile_context>

<pallas_src>
import jax
import jax.numpy as jnp
from jax.experimental import pallas as pl
from jax.experimental.pallas import tpu as pltpu


def _round_up(x: int, m: int) -> int:
    return ((x + m - 1) // m) * m


def _ctx_attn_kernel(x_ref, w_ref, b_ref, o_ref):
    # MXU matmul with f32 accumulation, bias add on the VPU, then sigmoid via
    # a single EUP transcendental: sigmoid(z) = 0.5 * (1 + tanh(z / 2)).
    z = jnp.dot(x_ref[...], w_ref[...], preferred_element_type=jnp.float32)
    z = z + b_ref[...]                       # (1, E) broadcast over rows
    o_ref[...] = (0.5 * jnp.tanh(0.5 * z) + 0.5).astype(o_ref.dtype)


def context_attention(context, weight, bias, *, block_b: int = 8192,
                      out_dtype=None):
    """sigmoid(context @ weight + bias).

    context: (B, C) float32
    weight : (C, E) float32   (transpose of PyTorch nn.Linear.weight)
    bias   : (E,)   float32
    returns: (B, E) out_dtype (defaults to context.dtype)
    """
    B, C = context.shape
    C2, E = weight.shape
    assert C == C2
    if out_dtype is None:
        out_dtype = context.dtype

    bias2d = bias.reshape(1, E)
    out_itemsize = jnp.dtype(out_dtype).itemsize
    in_itemsize = jnp.dtype(context.dtype).itemsize

    # ---- Batch tile size -----------------------------------------------------
    # Cap the double-buffered per-step working set (x tile + out tile, x2 for
    # double buffering) plus the resident weight/bias under ~24 MiB so it fits
    # every generation's scoped VMEM default (v7x: 32 MiB scoped / 64 MiB
    # physical).
    VMEM_BUDGET = 24 * 1024 * 1024
    resident = (C * E + E) * 4                       # weight + bias, f32
    per_row = 2 * (C * in_itemsize + E * out_itemsize)
    tb_cap = max(8, ((VMEM_BUDGET - resident) // per_row) // 8 * 8)

    TB = min(block_b, _round_up(B, 8), tb_cap)
    TB = max(8, (TB // 8) * 8)                       # sublane-aligned row tile

    # ---- Batch alignment: pad only to a multiple of 8 (at most 7 rows). ------
    # The grid uses cdiv, so the final block may be ragged; Pallas masks the
    # out-of-range rows (safe for this row-wise op -- no batch reduction).
    B_eff = _round_up(B, 8)
    if B_eff != B:
        context = jnp.pad(context, ((0, B_eff - B), (0, 0)))

    grid = (pl.cdiv(B_eff, TB),)

    out = pl.pallas_call(
        _ctx_attn_kernel,
        out_shape=jax.ShapeDtypeStruct((B_eff, E), out_dtype),
        grid_spec=pl.GridSpec(
            grid=grid,
            in_specs=[
                pl.BlockSpec((TB, C), lambda i: (i, 0)),   # batch tile
                pl.BlockSpec((C, E), lambda i: (0, 0)),    # VMEM-resident
                pl.BlockSpec((1, E), lambda i: (0, 0)),    # VMEM-resident
            ],
            out_specs=pl.BlockSpec((TB, E), lambda i: (i, 0)),
        ),
        compiler_params=pltpu.CompilerParams(
            dimension_semantics=("parallel",),  # shard batch tiles across TCs
        ),
    )(context, weight, bias2d)

    # Strip the (at most 7-row) batch alignment pad; no column slice needed.
    return out[:B] if B_eff != B else out


if __name__ == "__main__":
    # Small shapes consistent with the module.
    batch = 8
    context_dim = 32
    embedding_dim = 64

    key = jax.random.PRNGKey(0)
    k_ctx, k_w, k_b = jax.random.split(key, 3)

    # Deterministic parameter init (mimics nn.Linear's uniform(-1/sqrt(fan_in),
    # 1/sqrt(fan_in))).
    bound = 1.0 / jnp.sqrt(jnp.float32(context_dim))
    weight = jax.random.uniform(
        k_w, (context_dim, embedding_dim), jnp.float32, -bound, bound
    )
    bias = jax.random.uniform(
        k_b, (embedding_dim,), jnp.float32, -bound, bound
    )

    context = jax.random.normal(k_ctx, (batch, context_dim), jnp.float32)

    out = context_attention(context, weight, bias)
    out = jax.block_until_ready(out)

    # Reference check against plain JAX.
    ref = jax.nn.sigmoid(context @ weight + bias[None, :])
    assert out.shape == (batch, embedding_dim)
    assert jnp.allclose(out, ref, atol=1e-5, rtol=1e-5)

    print("KERNEL_OK")
</pallas_src>

<mosaic_0001>
module attributes {stable_mosaic.version = 11 : i64} {
  func.func @_ctx_attn_kernel(%arg0: i32, %arg1: memref<8x32xf32, #tpu.memory_space<vmem>>, %arg2: memref<32x64xf32, #tpu.memory_space<vmem>>, %arg3: memref<1x64xf32, #tpu.memory_space<vmem>>, %arg4: memref<8x64xf32, #tpu.memory_space<vmem>>) attributes {dimension_semantics = [#tpu.dimension_semantics<parallel>], iteration_bounds = array<i64: 1>, scalar_prefetch = 0 : i64, scratch_operands = 0 : i64, tpu.core_type = #tpu.core_type<tc>, window_params = [{transform_indices = @transform_0, window_bounds = array<i64: 8, 32>}, {pipeline_mode = #tpu.pipeline_mode<synchronous>, transform_indices = @transform_1, window_bounds = array<i64: 32, 64>}, {pipeline_mode = #tpu.pipeline_mode<synchronous>, transform_indices = @transform_2, window_bounds = array<i64: 1, 64>}, {transform_indices = @transform_3, window_bounds = array<i64: 8, 64>}]} {
    %c0 = arith.constant 0 : index
    %c0_0 = arith.constant 0 : index
    %0 = vector.load %arg1[%c0, %c0_0] : memref<8x32xf32, #tpu.memory_space<vmem>>, vector<8x32xf32>
    %c0_1 = arith.constant 0 : index
    %c0_2 = arith.constant 0 : index
    %1 = vector.load %arg2[%c0_1, %c0_2] : memref<32x64xf32, #tpu.memory_space<vmem>>, vector<32x64xf32>
    %cst = arith.constant dense<0.000000e+00> : vector<8x64xf32>
    %2 = tpu.matmul %0, %1, %cst {dimension_numbers = #tpu.dot_dimension_numbers<[1], [0], [0], [1], [0, 0, 1, 1], [], []>} : vector<8x32xf32>, vector<32x64xf32>, vector<8x64xf32> -> vector<8x64xf32>
    %c0_3 = arith.constant 0 : index
    %c0_4 = arith.constant 0 : index
    %3 = vector.load %arg3[%c0_3, %c0_4] : memref<1x64xf32, #tpu.memory_space<vmem>>, vector<1x64xf32>
    %4 = vector.broadcast %3 : vector<1x64xf32> to vector<8x64xf32>
    %5 = arith.addf %2, %4 : vector<8x64xf32>
    %cst_5 = arith.constant 5.000000e-01 : f32
    %6 = vector.broadcast %cst_5 : f32 to vector<8x64xf32>
    %7 = arith.mulf %6, %5 : vector<8x64xf32>
    %8 = math.tanh %7 : vector<8x64xf32>
    %cst_6 = arith.constant 5.000000e-01 : f32
    %9 = vector.broadcast %cst_6 : f32 to vector<8x64xf32>
    %10 = arith.mulf %9, %8 : vector<8x64xf32>
    %cst_7 = arith.constant 5.000000e-01 : f32
    %11 = vector.broadcast %cst_7 : f32 to vector<8x64xf32>
    %12 = arith.addf %10, %11 : vector<8x64xf32>
    %c0_8 = arith.constant 0 : index
    %c0_9 = arith.constant 0 : index
    %13 = vector.load %arg4[%c0_8, %c0_9] : memref<8x64xf32, #tpu.memory_space<vmem>>, vector<8x64xf32>
    tpu.vector_store %arg4[%c0_8, %c0_9], %12 {strides = array<i32>} : memref<8x64xf32, #tpu.memory_space<vmem>>, vector<8x64xf32>,
    return
  }
  func.func @transform_0(%arg0: i32) -> (i32, i32) {
    %c0_i32 = arith.constant 0 : i32
    %c0_i32_0 = arith.constant 0 : i32
    return %arg0, %c0_i32 : i32, i32
  }
  func.func @transform_1(%arg0: i32) -> (i32, i32) {
    %c0_i32 = arith.constant 0 : i32
    %c0_i32_0 = arith.constant 0 : i32
    %c0_i32_1 = arith.constant 0 : i32
    return %c0_i32, %c0_i32_0 : i32, i32
  }
  func.func @transform_2(%arg0: i32) -> (i32, i32) {
    %c0_i32 = arith.constant 0 : i32
    %c0_i32_0 = arith.constant 0 : i32
    %c0_i32_1 = arith.constant 0 : i32
    return %c0_i32, %c0_i32_0 : i32, i32
  }
  func.func @transform_3(%arg0: i32) -> (i32, i32) {
    %c0_i32 = arith.constant 0 : i32
    %c0_i32_0 = arith.constant 0 : i32
    return %arg0, %c0_i32 : i32, i32
  }
}

</mosaic_0001>

<bundles_post_ra>
// kernel: tpu_custom_call.1
= control target key start
LH: loop header
LB: loop body
LE: loop exit
PB: predicated region body
PF: predicated region fallthrough
CT: control target
= control target key end

     0   :  { %8 = vsyncpa [#allocation3], 0  ;;  %s329_s0 = inlined_call_operand.hbm [shape: f32[8,32], index: 0, kind: input, shape index: {}]   ;;  %s330_s1 = inlined_call_operand.hbm [shape: f32[32,64], index: 1, kind: input, shape index: {}]   ;;  %s331_s2 = inlined_call_operand.vmem [shape: f32[1,64], index: 2, kind: input, shape index: {}]   ;;  %s332_s3 = inlined_call_operand.hbm [shape: f32[8,64], index: 3, kind: output, shape index: {}]  }
   0x1   :  { %9 = vsyncpa [#allocation6], 0 }
   0x2   :  { %10 = vsyncpa [#allocation4], 0  ;;  %s255_s12 = smov [#allocation2]   ;;  %s256_s14 = smov [#allocation5]  }
   0x3   :  { %s17_s13 = sshll.u32 %s255_s12, 4  ;;  %s26_s15 = sshll.u32 %s256_s14, 4  ;;  %s18_s13 = int_to_ptr.vmem [resolvable:$true] %s17_s13  ;;  %s283_s15 = int_to_ptr.vmem [resolvable:$true] %s26_s15 }
   0x4   :  { %s183_s18 = scalar_lea.hbm %s329_s0, 128 }
   0x5   :  { %p184_p0 = scmp.ne.s32.totalorder %s329_s0, %s183_s18  ;;  %p187_p1 = scmp.lt.u32.totalorder %s183_s18, %s329_s0 }
   0x7   :  { %p189_p2 = pnand %p187_p1, %p184_p0 }
   0x9   :  { %192 = shalt.err (!%p189_p2)
}
   0xa   :  { %s193_s23 = scalar_lea.vmem %s18_s13, 128  ;;  %p198_p4 = scmp.lt.s32.totalorder %s18_s13, %s18_s13 }
   0xb   :  { %p194_p3 = scmp.ne.s32.totalorder %s18_s13, %s193_s23  ;;  %p199_p5 = scmp.lt.s32.totalorder %s193_s23, %s193_s23 }
   0xd   :  { %p200_p6 = por %p199_p5, %p198_p4 }
   0xf   :  { %p201_p7 = pnand %p200_p6, %p194_p3 }
  0x11   :  { %204 = shalt.err (!%p201_p7)
}
  0x12   :  { %20 = dma.hbm_to_vmem [thread:$0]  %s329_s0, 128, %s18_s13, [#allocation3]  }
  0x13   :  { %s205_s28 = scalar_lea.hbm %s330_s1, 512 }
  0x14   :  { %p206_p8 = scmp.ne.s32.totalorder %s330_s1, %s205_s28  ;;  %p209_p9 = scmp.lt.u32.totalorder %s205_s28, %s330_s1 }
  0x16   :  { %p211_p10 = pnand %p209_p9, %p206_p8 }
  0x18   :  { %214 = shalt.err (!%p211_p10)
}
  0x19   :  { %s215_s6 = scalar_lea.vmem %s283_s15, 512  ;;  %p220_p12 = scmp.lt.s32.totalorder %s283_s15, %s283_s15 }
  0x1a   :  { %p216_p11 = scmp.ne.s32.totalorder %s283_s15, %s215_s6  ;;  %p221_p13 = scmp.lt.s32.totalorder %s215_s6, %s215_s6 }
  0x1c   :  { %p222_p0 = por %p221_p13, %p220_p12 }
  0x1e   :  { %p223_p1 = pnand %p222_p0, %p216_p11 }
  0x20   :  { %226 = shalt.err (!%p223_p1)
}
  0x21   :  { %s257_s0 = smov 128   ;;  %s258_s7 = smov 8  }
  0x22   :  { %32 = dma.hbm_to_vmem [thread:$0]  %s330_s1, 512, %s283_s15, [#allocation6], %s257_s0, %s257_s0, %s258_s7  }
  0x23   :  { %249 = dma.done.wait [#allocation3], 128  }
  0x24   :  { %250 = vsyncadd [#allocation3], 4294967168 }
  0x25   :  { %251 = dma.done.wait [#allocation6], 512  }
  0x26   :  { %252 = vsyncadd [#allocation6], 4294966784  ;;  %v259_v0 = vmov 0.0|0.0   ;;  %vm260_vm0 = vmmov 0   ;;  %v261_v1 = vmov 0.0   ;;  %v42_v2 = vld [vmem:[#allocation5] sm:$0xff] }
  0x27   :  { %167 = vmatprep.subr.bf16.mxu0 %v259_v0  ;;  %164 = vmatprep.mubr.msk.f32.mxu0 %vm260_vm0, %v261_v1  ;;  %v43_v3 = vld [vmem:[#allocation5 + $0x8] sm:$0xff]  ;;  %v44_v4 = vld [vmem:[#allocation5 + $0x10] sm:$0xff]  ;;  %v45_v6 = vld [vmem:[#allocation5 + $0x18] sm:$0xff]  ;;  %vm53_vm1 = vcmask 261120   ;;  %s262_s11 = smov [#allocation7]   ;;  %vm131_vm2 = vcmask 523264  }
  0x28   :  { %v168_v5 = vpack.c.bf16 %v43_v3, %v42_v2  ;;  %v171_v7 = vpack.c.bf16 %v45_v6, %v44_v4  ;;  %v41_v8 = vld [vmem:[#allocation2] sm:$0xff]  ;;  %s139_s12 = sshll.u32 %s262_s11, 4  ;;  %s140_s12 = int_to_ptr.vmem [resolvable:$true] %s139_s12 }
  0x29   :  { %v149_v9 = vld [vmem:[%s331_s2] ss:$0 sm:$0xff]  ;;  %s227_s13 = scalar_lea.vmem %s140_s12, 128  ;;  %p232_p3 = scmp.lt.s32.totalorder %s140_s12, %s140_s12 }
  0x2a   :  { %169 = vmatpush3.bf16.msra.mxu0 %v168_v5  ;;  %p228_p2 = scmp.ne.s32.totalorder %s140_s12, %s227_s13  ;;  %p233_p4 = scmp.lt.s32.totalorder %s227_s13, %s227_s13 }
  0x2b   :  { %170 = vmatprep.subr.bf16.mxu0 %v259_v0 }
  0x2c   :  { %p234_p5 = por %p233_p4, %p232_p3 }
  0x2e   :  { %172 = vmatpush3.bf16.msra.mxu0 %v171_v7  ;;  %p235_p6 = pnand %p234_p5, %p228_p2 }
  0x31   :  { %165 = vmatmul.mubr.msk.f32.vlgmr.msra.gmra.mrb[0].mxu0 %vm53_vm1, %v41_v8 }
 0x104   :  { %v123_v10 = vpop.f32.mrb[0].mxu0 }
 0x105   :  { %v124_v11 = vadd.f32 %v149_v9, %v123_v10  ;;  %v166_v12 = vpop.f32.mrb[1].mxu0 }
 0x107   :  { %v127_v13 = vmul.f32 0.5, %v124_v11 }
 0x109   :  { %181 = vtanh.f32 %v127_v13 }
 0x113   :  { %v182_v14 = vpop.eup %181 }
 0x114   :  { %v129_v15 = vmul.f32 0.5, %v182_v14 }
 0x116   :  { %v130_v16 = vadd.f32 0.5, %v129_v15 }
 0x118   :  { %132 = vst.msk [vmem:[#allocation7] sm:$0xff] %vm131_vm2, %v130_v16 }
 0x119   :  { %238 = shalt.err (!%p235_p6)
}
 0x11a   :  { %s239_s15 = scalar_lea.hbm %s332_s3, 128 }
 0x11b   :  { %p240_p7 = scmp.ne.s32.totalorder %s332_s3, %s239_s15  ;;  %p243_p8 = scmp.lt.u32.totalorder %s239_s15, %s332_s3 }
 0x11d   :  { %p245_p9 = pnand %p243_p8, %p240_p7 }
 0x11f   :  { %248 = shalt.err (!%p245_p9)
}
 0x120   :  { %142 = dma.vmem_to_hbm [thread:$0]  %s140_s12, 128, %s332_s3, [#allocation4]  }
 0x121   :  { %253 = dma.done.wait [#allocation4], 128  }
 0x122   :  { %254 = vsyncadd [#allocation4], 4294967168 }
 0x123   :  { %146 = vsyncpa [#allocation3], 1 }
 0x124   :  { %147 = vsyncpa [#allocation6], 1 }
 0x125   :  { %148 = vsyncpa [#allocation4], 1 }

</bundles_post_ra>
